<compile_context>
chip_gen: v6e
topology: v6e:2x2x1
jax: 0.10.0
libtpu: 0.0.40
codegen_flags: <defaults>
</compile_context>

<pallas_src>
import functools

import jax
import jax.numpy as jnp
from jax.experimental import pallas as pl
from jax.experimental.pallas import tpu as pltpu


def _round_up(x, m):
    return ((x + m - 1) // m) * m


# ----------------------------------------------------------------------------
# Kernel: one LightGCN propagation layer  e_out = G @ e_in
#   G streamed as (t, t) bf16 blocks, e_in streamed as (t, Dp) bf16 blocks,
#   f32 accumulator resident in VMEM across the K (reduction) grid axis.
# ----------------------------------------------------------------------------
def _spmm_layer_kernel(g_ref, e_ref, o_ref, acc_ref):
    k = pl.program_id(1)

    @pl.when(k == 0)
    def _():
        acc_ref[...] = jnp.zeros_like(acc_ref)

    acc_ref[...] += jnp.dot(
        g_ref[...], e_ref[...], preferred_element_type=jnp.float32
    )

    @pl.when(k == pl.num_programs(1) - 1)
    def _():
        o_ref[...] = acc_ref[...]


def _spmm_layer(g_bf16, e_bf16, *, tile):
    Np = g_bf16.shape[0]
    Dp = e_bf16.shape[1]
    grid = (Np // tile, Np // tile)
    return pl.pallas_call(
        _spmm_layer_kernel,
        out_shape=jax.ShapeDtypeStruct((Np, Dp), jnp.float32),
        grid_spec=pltpu.PrefetchScalarGridSpec(
            num_scalar_prefetch=0,
            grid=grid,
            in_specs=[
                pl.BlockSpec((tile, tile), lambda i, k: (i, k)),  # G tile
                pl.BlockSpec((tile, Dp), lambda i, k: (k, 0)),    # emb slab
            ],
            out_specs=pl.BlockSpec((tile, Dp), lambda i, k: (i, 0)),
            scratch_shapes=[pltpu.VMEM((tile, Dp), jnp.float32)],
        ),
        compiler_params=pltpu.CompilerParams(
            # row tiles independent -> megacore-shardable on v7x;
            # reduction axis last, "arbitrary" (accumulator pattern).
            dimension_semantics=("parallel", "arbitrary"),
            # sized for v7x's smaller VMEM; buffers here are far below this.
            vmem_limit_bytes=32 * 1024 * 1024,
        ),
    )(g_bf16, e_bf16)


# ----------------------------------------------------------------------------
# LightGCN propagation (computer()):
#   light = mean([e, G@e, G^2@e, ..., G^L@e])
# One pipelined tiled pass per layer; bf16 matmul inputs, f32 layer sum.
# ----------------------------------------------------------------------------
def lightgcn_propagate(graph, all_emb, n_layers, *, tile=512):
    N, D = all_emb.shape
    Dp = _round_up(D, 128)                 # lane-dense feature dim
    t = min(tile, _round_up(N, 256))       # K tile multiple of 256, M tile = t
    Np = _round_up(N, t)

    g_pad = jnp.pad(graph.astype(jnp.bfloat16), ((0, Np - N), (0, Np - N)))
    e0 = jnp.pad(all_emb.astype(jnp.float32), ((0, Np - N), (0, Dp - D)))

    acc = e0                               # layer-0 term, f32
    e_cur = e0.astype(jnp.bfloat16)        # bf16 RHS for the MXU
    for _ in range(n_layers):
        e_next = _spmm_layer(g_pad, e_cur, tile=t)   # f32 [Np, Dp]
        acc = acc + e_next                           # f32 accumulation
        e_cur = e_next.astype(jnp.bfloat16)

    light = acc * (1.0 / float(n_layers + 1))
    return light[:N, :D]


# ----------------------------------------------------------------------------
# LightGCN forward: gamma[b] = <light_users[users[b]], light_items[items[b]]>
# ----------------------------------------------------------------------------
def lightgcn_forward(user_emb, item_emb, graph, users, items, n_layers):
    num_users = user_emb.shape[0]
    all_emb = jnp.concatenate([user_emb, item_emb], axis=0)       # [N, D]
    light = lightgcn_propagate(graph, all_emb, n_layers)          # [N, D]
    users_emb = light[:num_users][users]                          # [B, D]
    items_emb = light[num_users:][items]                          # [B, D]
    # Per perf review: a standalone pair-score pallas_call is pure overhead at
    # these sizes (~B*D FLOPs behind kernel-launch cost); let XLA fuse it.
    gamma = jnp.sum(users_emb * items_emb, axis=1)                # [B]
    return gamma


# ----------------------------------------------------------------------------
# Synthetic normalized graph (getSparseGraph convention, densified)
# ----------------------------------------------------------------------------
def build_norm_graph(key, num_users, num_items):
    R = jax.random.bernoulli(key, p=0.15, shape=(num_users, num_items)).astype(jnp.float32)
    N = num_users + num_items
    A = jnp.zeros((N, N), dtype=jnp.float32)
    A = A.at[:num_users, num_users:].set(R)
    A = A.at[num_users:, :num_users].set(R.T)
    deg = jnp.sum(A, axis=1)
    d_inv_sqrt = jnp.where(deg > 0, 1.0 / jnp.sqrt(deg), 0.0)
    return A * d_inv_sqrt[:, None] * d_inv_sqrt[None, :]


if __name__ == "__main__":
    num_users = 48
    num_items = 80
    latent_dim = 64          # config['latent_dim_rec'] (padded to 128 inside)
    n_layers = 3             # config['lightGCN_n_layers']
    batch = 8

    key = jax.random.PRNGKey(0)
    k_graph, k_u, k_i, k_users, k_items = jax.random.split(key, 5)

    # nn.init.normal_(weight, std=0.1) for both embedding tables
    user_emb = 0.1 * jax.random.normal(k_u, (num_users, latent_dim), dtype=jnp.float32)
    item_emb = 0.1 * jax.random.normal(k_i, (num_items, latent_dim), dtype=jnp.float32)
    graph = build_norm_graph(k_graph, num_users, num_items)

    users = jax.random.randint(k_users, (batch,), 0, num_users, dtype=jnp.int32)
    items = jax.random.randint(k_items, (batch,), 0, num_items, dtype=jnp.int32)

    fwd = jax.jit(functools.partial(lightgcn_forward, n_layers=n_layers))
    gamma = jax.block_until_ready(fwd(user_emb, item_emb, graph, users, items))
    assert gamma.shape == (batch,)

    # Reference A: mirrors the kernel numerics (bf16 matmul inputs, f32 accum).
    all_emb = jnp.concatenate([user_emb, item_emb], axis=0)
    g_bf16 = graph.astype(jnp.bfloat16)
    e = all_emb
    acc = all_emb
    for _ in range(n_layers):
        e = jnp.dot(g_bf16, e.astype(jnp.bfloat16), preferred_element_type=jnp.float32)
        acc = acc + e
    light_ref = acc / float(n_layers + 1)
    ref_bf16 = jnp.sum(light_ref[:num_users][users] * light_ref[num_users:][items], axis=1)
    assert jnp.allclose(gamma, ref_bf16, atol=2e-3, rtol=2e-3)

    # Reference B: original full-f32 semantics (loose tolerance for bf16 graph).
    e = all_emb
    acc = all_emb
    for _ in range(n_layers):
        e = graph @ e
        acc = acc + e
    light_f32 = acc / float(n_layers + 1)
    ref_f32 = jnp.sum(light_f32[:num_users][users] * light_f32[num_users:][items], axis=1)
    assert jnp.allclose(gamma, ref_f32, atol=5e-2, rtol=5e-2)

    print("KERNEL_OK")
</pallas_src>

<mosaic_0001>
module attributes {stable_mosaic.version = 11 : i64} {
  func.func @_spmm_layer_kernel(%arg0: i32, %arg1: i32, %arg2: memref<256x256xbf16, #tpu.memory_space<vmem>>, %arg3: memref<256x128xbf16, #tpu.memory_space<vmem>>, %arg4: memref<256x128xf32, #tpu.memory_space<vmem>>, %arg5: memref<256x128xf32, #tpu.memory_space<vmem>>) attributes {dimension_semantics = [#tpu.dimension_semantics<parallel>, #tpu.dimension_semantics<arbitrary>], iteration_bounds = array<i64: 1, 1>, scalar_prefetch = 0 : i64, scratch_operands = 1 : i64, tpu.core_type = #tpu.core_type<tc>, window_params = [{transform_indices = @transform_0, window_bounds = array<i64: 256, 256>}, {transform_indices = @transform_1, window_bounds = array<i64: 256, 128>}, {transform_indices = @transform_2, window_bounds = array<i64: 256, 128>}]} {
    %c0_i32 = arith.constant 0 : i32
    %0 = arith.cmpi eq, %arg1, %c0_i32 : i32
    %1 = arith.extui %0 : i1 to i32
    %c0_i32_0 = arith.constant 0 : i32
    %2 = arith.cmpi ne, %1, %c0_i32_0 : i32
    scf.if %2 {
      %cst_10 = arith.constant 0.000000e+00 : f32
      %12 = vector.broadcast %cst_10 : f32 to vector<256x128xf32>
      %c0_11 = arith.constant 0 : index
      %c0_12 = arith.constant 0 : index
      %13 = vector.load %arg5[%c0_11, %c0_12] : memref<256x128xf32, #tpu.memory_space<vmem>>, vector<256x128xf32>
      tpu.vector_store %arg5[%c0_11, %c0_12], %12 {strides = array<i32>} : memref<256x128xf32, #tpu.memory_space<vmem>>, vector<256x128xf32>,
    } else {
    }
    %c0 = arith.constant 0 : index
    %c0_1 = arith.constant 0 : index
    %3 = vector.load %arg5[%c0, %c0_1] : memref<256x128xf32, #tpu.memory_space<vmem>>, vector<256x128xf32>
    %c0_2 = arith.constant 0 : index
    %c0_3 = arith.constant 0 : index
    %4 = vector.load %arg2[%c0_2, %c0_3] : memref<256x256xbf16, #tpu.memory_space<vmem>>, vector<256x256xbf16>
    %c0_4 = arith.constant 0 : index
    %c0_5 = arith.constant 0 : index
    %5 = vector.load %arg3[%c0_4, %c0_5] : memref<256x128xbf16, #tpu.memory_space<vmem>>, vector<256x128xbf16>
    %cst = arith.constant dense<0.000000e+00> : vector<256x128xf32>
    %6 = tpu.matmul %4, %5, %cst {dimension_numbers = #tpu.dot_dimension_numbers<[1], [0], [0], [1], [0, 0, 1, 1], [], []>} : vector<256x256xbf16>, vector<256x128xbf16>, vector<256x128xf32> -> vector<256x128xf32>
    %7 = arith.addf %3, %6 : vector<256x128xf32>
    %c0_6 = arith.constant 0 : index
    %c0_7 = arith.constant 0 : index
    %8 = vector.load %arg5[%c0_6, %c0_7] : memref<256x128xf32, #tpu.memory_space<vmem>>, vector<256x128xf32>
    tpu.vector_store %arg5[%c0_6, %c0_7], %7 {strides = array<i32>} : memref<256x128xf32, #tpu.memory_space<vmem>>, vector<256x128xf32>,
    %c0_i32_8 = arith.constant 0 : i32
    %9 = arith.cmpi eq, %arg1, %c0_i32_8 : i32
    %10 = arith.extui %9 : i1 to i32
    %c0_i32_9 = arith.constant 0 : i32
    %11 = arith.cmpi ne, %10, %c0_i32_9 : i32
    scf.if %11 {
      %c0_10 = arith.constant 0 : index
      %c0_11 = arith.constant 0 : index
      %12 = vector.load %arg5[%c0_10, %c0_11] : memref<256x128xf32, #tpu.memory_space<vmem>>, vector<256x128xf32>
      %c0_12 = arith.constant 0 : index
      %c0_13 = arith.constant 0 : index
      %13 = vector.load %arg4[%c0_12, %c0_13] : memref<256x128xf32, #tpu.memory_space<vmem>>, vector<256x128xf32>
      tpu.vector_store %arg4[%c0_12, %c0_13], %12 {strides = array<i32>} : memref<256x128xf32, #tpu.memory_space<vmem>>, vector<256x128xf32>,
    } else {
    }
    return
  }
  func.func @transform_0(%arg0: i32, %arg1: i32) -> (i32, i32) {
    %c0_i32 = arith.constant 0 : i32
    return %arg0, %arg1 : i32, i32
  }
  func.func @transform_1(%arg0: i32, %arg1: i32) -> (i32, i32) {
    %c0_i32 = arith.constant 0 : i32
    %c0_i32_0 = arith.constant 0 : i32
    return %arg1, %c0_i32 : i32, i32
  }
  func.func @transform_2(%arg0: i32, %arg1: i32) -> (i32, i32) {
    %c0_i32 = arith.constant 0 : i32
    %c0_i32_0 = arith.constant 0 : i32
    return %arg0, %c0_i32 : i32, i32
  }
}

</mosaic_0001>

<bundles_post_ra>
// kernel: lightgcn_forward.3
= control target key start
LH: loop header
LB: loop body
LE: loop exit
PB: predicated region body
PF: predicated region fallthrough
CT: control target
= control target key end

     0   :  { %s1191_s1 = inlined_call_operand.vmem [shape: bf16[256,128], index: 1, kind: input, shape index: {}]   ;;  %s1192_s0 = inlined_call_operand.vmem [shape: bf16[256,256], index: 0, kind: input, shape index: {}]   ;;  %s1193_s2 = inlined_call_operand.vmem [shape: f32[256,128], index: 2, kind: output, shape index: {}]  }
   0x1   :  { %v872_v0 = vld [vmem:[%s1191_s1 + $0x78] sm:$0xff]   ;;  %v874_v2 = vld [vmem:[%s1191_s1 + $0x70] sm:$0xff]   ;;  %v876_v4 = vld [vmem:[%s1191_s1 + $0x68] sm:$0xff]  }
   0x2   :  { %v873_v1 = vld [vmem:[%s1191_s1 + $0x38] sm:$0xff]   ;;  %744 = vmatprep.subr.bf16.mxu0 %v872_v0  ;;  %856 = vmatprep.subr.bf16.mxu1 %v872_v0  ;;  %v875_v3 = vld [vmem:[%s1191_s1 + $0x30] sm:$0xff]   ;;  %v877_v5 = vld [vmem:[%s1191_s1 + $0x28] sm:$0xff]  }
   0x3   :  { %745 = vmatpush3.bf16.msra.mxu0 %v873_v1  ;;  %864 = vmatpush3.bf16.msra.mxu1 %v873_v1  ;;  %v878_v6 = vld [vmem:[%s1191_s1 + $0x60] sm:$0xff]   ;;  %v880_v8 = vld [vmem:[%s1191_s1 + $0x58] sm:$0xff]   ;;  %v882_v10 = vld [vmem:[%s1191_s1 + $0x50] sm:$0xff]  }
   0x4   :  { %746 = vmatprep.subr.bf16.mxu0 %v874_v2  ;;  %857 = vmatprep.subr.bf16.mxu1 %v874_v2  ;;  %v879_v7 = vld [vmem:[%s1191_s1 + $0x20] sm:$0xff]   ;;  %v881_v9 = vld [vmem:[%s1191_s1 + $0x18] sm:$0xff]   ;;  %v883_v13 = vld [vmem:[%s1191_s1 + $0x10] sm:$0xff]  }
   0x5   :  { %v890_v11 = vld [vmem:[%s1192_s0 + $0x4] ss:$8 sps:$4 sm:$0xff]   ;;  %v888_v18 = vld [vmem:[%s1192_s0] ss:$8 sps:$4 sm:$0xff]   ;;  %v894_v20 = vld [vmem:[%s1192_s0 + $0x14] ss:$8 sps:$4 sm:$0xff]  }
   0x6   :  { %v893_v12 = vld [vmem:[%s1192_s0 + $0x84] ss:$8 sps:$4 sm:$0xff]   ;;  %432 = vmatprep.mubr.bf16.mxu0 %v890_v11  ;;  %v891_v19 = vld [vmem:[%s1192_s0 + $0x80] ss:$8 sps:$4 sm:$0xff]   ;;  %v896_v21 = vld [vmem:[%s1192_s0 + $0x94] ss:$8 sps:$4 sm:$0xff]  }
   0x7   :  { %747 = vmatpush3.bf16.msra.mxu0 %v875_v3  ;;  %865 = vmatpush3.bf16.msra.mxu1 %v875_v3  ;;  %v884_v14 = vld [vmem:[%s1191_s1 + $0x48] sm:$0xff]   ;;  %v886_v16 = vld [vmem:[%s1191_s1 + $0x40] sm:$0xff]   ;;  %v898_v22 = vld [vmem:[%s1192_s0 + $0x10] ss:$8 sps:$4 sm:$0xff]  }
   0x8   :  { %748 = vmatprep.subr.bf16.mxu0 %v876_v4  ;;  %858 = vmatprep.subr.bf16.mxu1 %v876_v4  ;;  %v885_v15 = vld [vmem:[%s1191_s1 + $0x8] sm:$0xff]   ;;  %v887_v17 = vld [vmem:[%s1191_s1] sm:$0xff]   ;;  %v899_v23 = vld [vmem:[%s1192_s0 + $0x90] ss:$8 sps:$4 sm:$0xff]  }
   0x9   :  { %496 = vmatprep.mubr.bf16.mxu1 %v893_v12  ;;  %v900_v24 = vld [vmem:[%s1192_s0 + $0x24] ss:$8 sps:$4 sm:$0xff]   ;;  %v904_v26 = vld [vmem:[%s1192_s0 + $0x20] ss:$8 sps:$4 sm:$0xff]   ;;  %v906_v28 = vld [vmem:[%s1192_s0 + $0x34] ss:$8 sps:$4 sm:$0xff]  }
   0xa   :  { %v902_v25 = vld [vmem:[%s1192_s0 + $0xa4] ss:$8 sps:$4 sm:$0xff]   ;;  %v905_v27 = vld [vmem:[%s1192_s0 + $0xa0] ss:$8 sps:$4 sm:$0xff]   ;;  %v908_v29 = vld [vmem:[%s1192_s0 + $0xb4] ss:$8 sps:$4 sm:$0xff]  }
   0xb   :  { %749 = vmatpush3.bf16.msra.mxu0 %v877_v5  ;;  %866 = vmatpush3.bf16.msra.mxu1 %v877_v5  ;;  %v910_v30 = vld [vmem:[%s1192_s0 + $0x30] ss:$8 sps:$4 sm:$0xff]   ;;  %v912_v32 = vld [vmem:[%s1192_s0 + $0x44] ss:$8 sps:$4 sm:$0xff]   ;;  %v916_v34 = vld [vmem:[%s1192_s0 + $0x40] ss:$8 sps:$4 sm:$0xff]  }
   0xc   :  { %750 = vmatprep.subr.bf16.mxu0 %v878_v6  ;;  %859 = vmatprep.subr.bf16.mxu1 %v878_v6  ;;  %v911_v31 = vld [vmem:[%s1192_s0 + $0xb0] ss:$8 sps:$4 sm:$0xff]   ;;  %v914_v33 = vld [vmem:[%s1192_s0 + $0xc4] ss:$8 sps:$4 sm:$0xff]   ;;  %v917_v35 = vld [vmem:[%s1192_s0 + $0xc0] ss:$8 sps:$4 sm:$0xff]  }
   0xd   :  { %v918_v36 = vld [vmem:[%s1192_s0 + $0x54] ss:$8 sps:$4 sm:$0xff]   ;;  %v922_v38 = vld [vmem:[%s1192_s0 + $0x50] ss:$8 sps:$4 sm:$0xff]   ;;  %v924_v40 = vld [vmem:[%s1192_s0 + $0x64] ss:$8 sps:$4 sm:$0xff]  }
   0xe   :  { %v920_v37 = vld [vmem:[%s1192_s0 + $0xd4] ss:$8 sps:$4 sm:$0xff]   ;;  %v923_v39 = vld [vmem:[%s1192_s0 + $0xd0] ss:$8 sps:$4 sm:$0xff]   ;;  %v926_v41 = vld [vmem:[%s1192_s0 + $0xe4] ss:$8 sps:$4 sm:$0xff]  }
   0xf   :  { %751 = vmatpush3.bf16.msra.mxu0 %v879_v7  ;;  %867 = vmatpush3.bf16.msra.mxu1 %v879_v7  ;;  %v928_v42 = vld [vmem:[%s1192_s0 + $0x60] ss:$8 sps:$4 sm:$0xff]   ;;  %v930_v44 = vld [vmem:[%s1192_s0 + $0x74] ss:$8 sps:$4 sm:$0xff]   ;;  %v934_v46 = vld [vmem:[%s1192_s0 + $0x70] ss:$8 sps:$4 sm:$0xff]  }
  0x10   :  { %752 = vmatprep.subr.bf16.mxu0 %v880_v8  ;;  %860 = vmatprep.subr.bf16.mxu1 %v880_v8  ;;  %v929_v43 = vld [vmem:[%s1192_s0 + $0xe0] ss:$8 sps:$4 sm:$0xff]   ;;  %v932_v45 = vld [vmem:[%s1192_s0 + $0xf4] ss:$8 sps:$4 sm:$0xff]   ;;  %v935_v47 = vld [vmem:[%s1192_s0 + $0xf0] ss:$8 sps:$4 sm:$0xff]  }
  0x13   :  { %753 = vmatpush3.bf16.msra.mxu0 %v881_v9  ;;  %868 = vmatpush3.bf16.msra.mxu1 %v881_v9 }
  0x14   :  { %754 = vmatprep.subr.bf16.mxu0 %v882_v10  ;;  %861 = vmatprep.subr.bf16.mxu1 %v882_v10 }
  0x17   :  { %755 = vmatpush3.bf16.msra.mxu0 %v883_v13  ;;  %869 = vmatpush3.bf16.msra.mxu1 %v883_v13 }
  0x18   :  { %756 = vmatprep.subr.bf16.mxu0 %v884_v14  ;;  %862 = vmatprep.subr.bf16.mxu1 %v884_v14 }
  0x1b   :  { %757 = vmatpush3.bf16.msra.mxu0 %v885_v15  ;;  %870 = vmatpush3.bf16.msra.mxu1 %v885_v15 }
  0x1c   :  { %758 = vmatprep.subr.bf16.mxu0 %v886_v16  ;;  %863 = vmatprep.subr.bf16.mxu1 %v886_v16 }
  0x1f   :  { %759 = vmatpush3.bf16.msra.mxu0 %v887_v17  ;;  %871 = vmatpush3.bf16.msra.mxu1 %v887_v17 }
  0x22   :  { %433 = vmatmul.mubr.bf16.vlgmr.msra.gmra.mxu0 %v888_v18  ;;  %497 = vmatmul.mubr.bf16.vlgmr.msra.gmra.mxu1 %v891_v19 }
  0x23   :  { %440 = vmatprep.mubr.bf16.mxu0 %v894_v20  ;;  %504 = vmatprep.mubr.bf16.mxu1 %v896_v21 }
  0x2a   :  { %441 = vmatmul.mubr.bf16.gmra.mxu0 %v898_v22  ;;  %505 = vmatmul.mubr.bf16.gmra.mxu1 %v899_v23 }
  0x2b   :  { %448 = vmatprep.mubr.bf16.mxu0 %v900_v24  ;;  %512 = vmatprep.mubr.bf16.mxu1 %v902_v25 }
  0x32   :  { %449 = vmatmul.mubr.bf16.gmra.mxu0 %v904_v26  ;;  %513 = vmatmul.mubr.bf16.gmra.mxu1 %v905_v27 }
  0x33   :  { %456 = vmatprep.mubr.bf16.mxu0 %v906_v28  ;;  %520 = vmatprep.mubr.bf16.mxu1 %v908_v29 }
  0x3a   :  { %457 = vmatmul.mubr.bf16.gmra.mxu0 %v910_v30  ;;  %521 = vmatmul.mubr.bf16.gmra.mxu1 %v911_v31 }
  0x3b   :  { %464 = vmatprep.mubr.bf16.mxu0 %v912_v32  ;;  %528 = vmatprep.mubr.bf16.mxu1 %v914_v33 }
  0x42   :  { %465 = vmatmul.mubr.bf16.gmra.mxu0 %v916_v34  ;;  %529 = vmatmul.mubr.bf16.gmra.mxu1 %v917_v35 }
  0x43   :  { %472 = vmatprep.mubr.bf16.mxu0 %v918_v36  ;;  %536 = vmatprep.mubr.bf16.mxu1 %v920_v37 }
  0x4a   :  { %473 = vmatmul.mubr.bf16.gmra.mxu0 %v922_v38  ;;  %537 = vmatmul.mubr.bf16.gmra.mxu1 %v923_v39 }
  0x4b   :  { %480 = vmatprep.mubr.bf16.mxu0 %v924_v40  ;;  %544 = vmatprep.mubr.bf16.mxu1 %v926_v41 }
  0x52   :  { %481 = vmatmul.mubr.bf16.gmra.mxu0 %v928_v42  ;;  %545 = vmatmul.mubr.bf16.gmra.mxu1 %v929_v43 }
  0x53   :  { %488 = vmatprep.mubr.bf16.mxu0 %v930_v44  ;;  %552 = vmatprep.mubr.bf16.mxu1 %v932_v45 }
  0x5a   :  { %489 = vmatmul.mubr.bf16.gmra.mxu0 %v934_v46  ;;  %553 = vmatmul.mubr.bf16.gmra.mxu1 %v935_v47 }
  0xe2   :  { %v760_v48 = vpop.f32.mrf.mxu0  ;;  %v808_v49 = vpop.f32.mrf.mxu1 }
  0xe4   :  { %v761_v50 = vpop.f32.mrf.mxu0  ;;  %v809_v51 = vpop.f32.mrf.mxu1 }
  0xe5   :  { %v762_v52 = vadd.f32 %v761_v50, %v760_v48  ;;  %v810_v53 = vadd.f32 %v809_v51, %v808_v49 }
  0xe6   :  { %v763_v54 = vpop.f32.mrf.mxu0  ;;  %v811_v55 = vpop.f32.mrf.mxu1 }
  0xe7   :  { %660 = vst [vmem:[%s1193_s2] sm:$0xff] %v762_v52  ;;  %676 = vst [vmem:[%s1193_s2 + $0x80] sm:$0xff] %v810_v53 }
  0xe8   :  { %v764_v56 = vpop.f32.mrf.mxu0  ;;  %v812_v57 = vpop.f32.mrf.mxu1 }
  0xe9   :  { %v765_v58 = vadd.f32 %v764_v56, %v763_v54  ;;  %v813_v59 = vadd.f32 %v812_v57, %v811_v55 }
  0xea   :  { %v766_v60 = vpop.f32.mrf.mxu0  ;;  %v814_v61 = vpop.f32.mrf.mxu1 }
  0xeb   :  { %661 = vst [vmem:[%s1193_s2 + $0x8] sm:$0xff] %v765_v58  ;;  %677 = vst [vmem:[%s1193_s2 + $0x88] sm:$0xff] %v813_v59 }
  0xec   :  { %v767_v62 = vpop.f32.mrf.mxu0  ;;  %v815_v63 = vpop.f32.mrf.mxu1 }
  0xed   :  { %v768_v0 = vadd.f32 %v767_v62, %v766_v60  ;;  %v816_v1 = vadd.f32 %v815_v63, %v814_v61 }
  0xee   :  { %v769_v2 = vpop.f32.mrf.mxu0  ;;  %v817_v3 = vpop.f32.mrf.mxu1 }
  0xef   :  { %662 = vst [vmem:[%s1193_s2 + $0x10] sm:$0xff] %v768_v0  ;;  %678 = vst [vmem:[%s1193_s2 + $0x90] sm:$0xff] %v816_v1 }
  0xf0   :  { %v770_v4 = vpop.f32.mrf.mxu0  ;;  %v818_v5 = vpop.f32.mrf.mxu1 }
  0xf1   :  { %v771_v6 = vadd.f32 %v770_v4, %v769_v2  ;;  %v819_v7 = vadd.f32 %v818_v5, %v817_v3 }
  0xf2   :  { %v772_v8 = vpop.f32.mrf.mxu0  ;;  %v820_v9 = vpop.f32.mrf.mxu1 }
  0xf3   :  { %663 = vst [vmem:[%s1193_s2 + $0x18] sm:$0xff] %v771_v6  ;;  %679 = vst [vmem:[%s1193_s2 + $0x98] sm:$0xff] %v819_v7 }
  0xf4   :  { %v773_v10 = vpop.f32.mrf.mxu0  ;;  %v821_v11 = vpop.f32.mrf.mxu1 }
  0xf5   :  { %v774_v12 = vadd.f32 %v773_v10, %v772_v8  ;;  %v822_v13 = vadd.f32 %v821_v11, %v820_v9 }
  0xf6   :  { %v775_v14 = vpop.f32.mrf.mxu0  ;;  %v823_v15 = vpop.f32.mrf.mxu1 }
  0xf7   :  { %664 = vst [vmem:[%s1193_s2 + $0x20] sm:$0xff] %v774_v12  ;;  %680 = vst [vmem:[%s1193_s2 + $0xa0] sm:$0xff] %v822_v13 }
  0xf8   :  { %v776_v16 = vpop.f32.mrf.mxu0  ;;  %v824_v17 = vpop.f32.mrf.mxu1 }
  0xf9   :  { %v777_v18 = vadd.f32 %v776_v16, %v775_v14  ;;  %v825_v19 = vadd.f32 %v824_v17, %v823_v15 }
  0xfa   :  { %v778_v20 = vpop.f32.mrf.mxu0  ;;  %v826_v21 = vpop.f32.mrf.mxu1 }
  0xfb   :  { %665 = vst [vmem:[%s1193_s2 + $0x28] sm:$0xff] %v777_v18  ;;  %681 = vst [vmem:[%s1193_s2 + $0xa8] sm:$0xff] %v825_v19 }
  0xfc   :  { %v779_v22 = vpop.f32.mrf.mxu0  ;;  %v827_v23 = vpop.f32.mrf.mxu1 }
  0xfd   :  { %v780_v24 = vadd.f32 %v779_v22, %v778_v20  ;;  %v828_v25 = vadd.f32 %v827_v23, %v826_v21 }
  0xfe   :  { %v781_v26 = vpop.f32.mrf.mxu0  ;;  %v829_v27 = vpop.f32.mrf.mxu1 }
  0xff   :  { %666 = vst [vmem:[%s1193_s2 + $0x30] sm:$0xff] %v780_v24  ;;  %682 = vst [vmem:[%s1193_s2 + $0xb0] sm:$0xff] %v828_v25 }
 0x100   :  { %v782_v28 = vpop.f32.mrf.mxu0  ;;  %v830_v29 = vpop.f32.mrf.mxu1 }
 0x101   :  { %v783_v30 = vadd.f32 %v782_v28, %v781_v26  ;;  %v831_v31 = vadd.f32 %v830_v29, %v829_v27 }
 0x102   :  { %v784_v32 = vpop.f32.mrf.mxu0  ;;  %v832_v33 = vpop.f32.mrf.mxu1 }
 0x103   :  { %667 = vst [vmem:[%s1193_s2 + $0x38] sm:$0xff] %v783_v30  ;;  %683 = vst [vmem:[%s1193_s2 + $0xb8] sm:$0xff] %v831_v31 }
 0x104   :  { %v785_v34 = vpop.f32.mrf.mxu0  ;;  %v833_v35 = vpop.f32.mrf.mxu1 }
 0x105   :  { %v786_v36 = vadd.f32 %v785_v34, %v784_v32  ;;  %v834_v37 = vadd.f32 %v833_v35, %v832_v33 }
 0x106   :  { %v787_v38 = vpop.f32.mrf.mxu0  ;;  %v835_v39 = vpop.f32.mrf.mxu1 }
 0x107   :  { %668 = vst [vmem:[%s1193_s2 + $0x40] sm:$0xff] %v786_v36  ;;  %684 = vst [vmem:[%s1193_s2 + $0xc0] sm:$0xff] %v834_v37 }
 0x108   :  { %v788_v40 = vpop.f32.mrf.mxu0  ;;  %v836_v41 = vpop.f32.mrf.mxu1 }
 0x109   :  { %v789_v42 = vadd.f32 %v788_v40, %v787_v38  ;;  %v837_v43 = vadd.f32 %v836_v41, %v835_v39 }
 0x10a   :  { %v790_v44 = vpop.f32.mrf.mxu0  ;;  %v838_v45 = vpop.f32.mrf.mxu1 }
 0x10b   :  { %669 = vst [vmem:[%s1193_s2 + $0x48] sm:$0xff] %v789_v42  ;;  %685 = vst [vmem:[%s1193_s2 + $0xc8] sm:$0xff] %v837_v43 }
 0x10c   :  { %v791_v46 = vpop.f32.mrf.mxu0  ;;  %v839_v47 = vpop.f32.mrf.mxu1 }
 0x10d   :  { %v792_v48 = vadd.f32 %v791_v46, %v790_v44  ;;  %v840_v49 = vadd.f32 %v839_v47, %v838_v45 }
 0x10e   :  { %v793_v50 = vpop.f32.mrf.mxu0  ;;  %v841_v51 = vpop.f32.mrf.mxu1 }
 0x10f   :  { %670 = vst [vmem:[%s1193_s2 + $0x50] sm:$0xff] %v792_v48  ;;  %686 = vst [vmem:[%s1193_s2 + $0xd0] sm:$0xff] %v840_v49 }
 0x110   :  { %v794_v52 = vpop.f32.mrf.mxu0  ;;  %v842_v53 = vpop.f32.mrf.mxu1 }
 0x111   :  { %v795_v54 = vadd.f32 %v794_v52, %v793_v50  ;;  %v843_v55 = vadd.f32 %v842_v53, %v841_v51 }
 0x112   :  { %v796_v56 = vpop.f32.mrf.mxu0  ;;  %v844_v57 = vpop.f32.mrf.mxu1 }
 0x113   :  { %671 = vst [vmem:[%s1193_s2 + $0x58] sm:$0xff] %v795_v54  ;;  %687 = vst [vmem:[%s1193_s2 + $0xd8] sm:$0xff] %v843_v55 }
 0x114   :  { %v797_v58 = vpop.f32.mrf.mxu0  ;;  %v845_v59 = vpop.f32.mrf.mxu1 }
 0x115   :  { %v798_v60 = vadd.f32 %v797_v58, %v796_v56  ;;  %v846_v61 = vadd.f32 %v845_v59, %v844_v57 }
 0x116   :  { %v799_v62 = vpop.f32.mrf.mxu0  ;;  %v847_v63 = vpop.f32.mrf.mxu1 }
 0x117   :  { %672 = vst [vmem:[%s1193_s2 + $0x60] sm:$0xff] %v798_v60  ;;  %688 = vst [vmem:[%s1193_s2 + $0xe0] sm:$0xff] %v846_v61 }
 0x118   :  { %v800_v0 = vpop.f32.mrf.mxu0  ;;  %v848_v1 = vpop.f32.mrf.mxu1 }
 0x119   :  { %v801_v2 = vadd.f32 %v800_v0, %v799_v62  ;;  %v849_v3 = vadd.f32 %v848_v1, %v847_v63 }
 0x11a   :  { %v802_v4 = vpop.f32.mrf.mxu0  ;;  %v850_v5 = vpop.f32.mrf.mxu1 }
 0x11b   :  { %673 = vst [vmem:[%s1193_s2 + $0x68] sm:$0xff] %v801_v2  ;;  %689 = vst [vmem:[%s1193_s2 + $0xe8] sm:$0xff] %v849_v3 }
 0x11c   :  { %v803_v6 = vpop.f32.mrf.mxu0  ;;  %v851_v7 = vpop.f32.mrf.mxu1 }
 0x11d   :  { %v804_v8 = vadd.f32 %v803_v6, %v802_v4  ;;  %v852_v9 = vadd.f32 %v851_v7, %v850_v5 }
 0x11e   :  { %v805_v10 = vpop.f32.mrf.mxu0  ;;  %v853_v11 = vpop.f32.mrf.mxu1 }
 0x11f   :  { %674 = vst [vmem:[%s1193_s2 + $0x70] sm:$0xff] %v804_v8  ;;  %690 = vst [vmem:[%s1193_s2 + $0xf0] sm:$0xff] %v852_v9 }
 0x120   :  { %v806_v12 = vpop.f32.mrf.mxu0  ;;  %v854_v13 = vpop.f32.mrf.mxu1 }
 0x121   :  { %v807_v14 = vadd.f32 %v806_v12, %v805_v10  ;;  %v855_v15 = vadd.f32 %v854_v13, %v853_v11 }
 0x123   :  { %675 = vst [vmem:[%s1193_s2 + $0x78] sm:$0xff] %v807_v14  ;;  %691 = vst [vmem:[%s1193_s2 + $0xf8] sm:$0xff] %v855_v15 }

</bundles_post_ra>
